<compile_context>
chip_gen: v7x
topology: tpu7x:2x2x1
jax: 0.10.0
libtpu: 0.0.40
codegen_flags: <defaults>
</compile_context>

<pallas_src>
import jax
import jax.numpy as jnp
from jax.experimental import pallas as pl
from jax.experimental.pallas import tpu as pltpu


OBS_DIM = 6
OBS_PAD = 8            # K padded to the 8-sublane boundary (zero rows in w1)
HL = [128, 128]
ACT_DIM = 2
OUT_DIM = ACT_DIM * 2  # mean + log_std per action dim = 4
OUT_PAD = 8            # narrow, contiguous output array (block spans full width)
W3_PAD = 128           # keep the layer-3 matmul at a full 128-lane N
_SPLIT_THRESHOLD = 256  # min (8-aligned) batch for which we force a 2-step grid


def _round_up(n, m):
    return ((n + m - 1) // m) * m


def _mlp_kernel(x_ref, w1_ref, b1_ref, w2_ref, b2_ref, w3_ref, b3_ref, o_ref):
    """Whole 3-layer MLP for one batch tile. All weights resident in VMEM.

    bf16 operands feed the MXU; accumulation, bias-add and ReLU are f32.
    """
    x = x_ref[...]  # (tile, OBS_PAD) bf16

    # Layer 1: (tile, 8) @ (8, 128) + b1, ReLU   (padded K rows are exact zeros)
    h = jnp.dot(x, w1_ref[...], preferred_element_type=jnp.float32)
    h = jnp.maximum(h + b1_ref[...], 0.0)

    # Layer 2: (tile, 128) @ (128, 128) + b2, ReLU
    h = jnp.dot(h.astype(jnp.bfloat16), w2_ref[...],
                preferred_element_type=jnp.float32)
    h = jnp.maximum(h + b2_ref[...], 0.0)

    # Output layer: (tile, 128) @ (128, 128); only the first OUT_PAD lanes are
    # real (cols >= OUT_DIM of w3 are zeros) and only those are stored.
    o = jnp.dot(h.astype(jnp.bfloat16), w3_ref[...],
                preferred_element_type=jnp.float32)
    o_ref[...] = (o[:, :OUT_PAD] + b3_ref[...]).astype(o_ref.dtype)


def prepare_params(p):
    """One-time param prep (pad + cast) so no per-call padding ops are needed.

    Input layout: w* of shape (in, out) float32, b* of shape (1, out) float32.
    """
    w1 = jnp.zeros((OBS_PAD, HL[0]), jnp.bfloat16).at[:OBS_DIM, :].set(
        p["w1"].astype(jnp.bfloat16))
    w2 = p["w2"].astype(jnp.bfloat16)
    w3 = jnp.zeros((HL[1], W3_PAD), jnp.bfloat16).at[:, :OUT_DIM].set(
        p["w3"].astype(jnp.bfloat16))
    b3 = jnp.zeros((1, OUT_PAD), jnp.float32).at[:, :OUT_DIM].set(p["b3"])
    return {
        "w1": w1, "b1": p["b1"].astype(jnp.float32),
        "w2": w2, "b2": p["b2"].astype(jnp.float32),
        "w3": w3, "b3": b3,
    }


def vpg_forward(x, params, *, batch_tile=512):
    """x: (B, OBS_DIM) float32. params: output of prepare_params().

    The wrapper pads batch / K internally and slices the result back, so any
    batch size works and padded rows/columns never leak to the caller.
    """
    B = x.shape[0]
    assert x.shape[1] == OBS_DIM

    tile = max(8, int(batch_tile))
    b8 = _round_up(B, 8)
    if b8 <= tile:
        if b8 >= _SPLIT_THRESHOLD:
            # Enough rows that a 2-step "parallel" grid can use both TCs (v7x).
            tile = _round_up(-(-b8 // 2), 8)
        else:
            # Whole (8-aligned) batch in one tile: single grid step, no waste.
            tile = b8
    B_pad = _round_up(b8, tile)
    grid = (B_pad // tile,)

    # Pad batch rows + obs dim (6->8, exact no-op through the zero w1 rows) and
    # cast to bf16 for the MXU / halved x DMA.
    x_p = jnp.zeros((B_pad, OBS_PAD), jnp.bfloat16).at[:B, :OBS_DIM].set(
        x.astype(jnp.bfloat16))

    w1, b1 = params["w1"], params["b1"]
    w2, b2 = params["w2"], params["b2"]
    w3, b3 = params["w3"], params["b3"]

    # Weights/biases are small: pass full blocks, constant index_map.
    full = lambda arr: pl.BlockSpec(arr.shape, lambda i: (0,) * arr.ndim)

    flops = 2 * B_pad * (OBS_PAD * HL[0] + HL[0] * HL[1] + HL[1] * W3_PAD)
    bytes_accessed = (
        2 * B_pad * OBS_PAD                                        # x (bf16)
        + 2 * (OBS_PAD * HL[0] + HL[0] * HL[1] + HL[1] * W3_PAD)   # weights (bf16)
        + 4 * (HL[0] + HL[1] + OUT_PAD)                            # biases (f32)
        + 4 * B_pad * OUT_PAD                                      # out (f32)
    )

    out_padded = pl.pallas_call(
        _mlp_kernel,
        out_shape=jax.ShapeDtypeStruct((B_pad, OUT_PAD), jnp.float32),
        grid_spec=pltpu.PrefetchScalarGridSpec(
            num_scalar_prefetch=0,
            grid=grid,
            in_specs=[
                pl.BlockSpec((tile, OBS_PAD), lambda i: (i, 0)),  # x tile
                full(w1), full(b1),
                full(w2), full(b2),
                full(w3), full(b3),
            ],
            out_specs=pl.BlockSpec((tile, OUT_PAD), lambda i: (i, 0)),
        ),
        compiler_params=pltpu.CompilerParams(
            dimension_semantics=("parallel",),  # shards tiles across TCs on v7x
        ),
        cost_estimate=pl.CostEstimate(
            flops=flops, transcendentals=0, bytes_accessed=bytes_accessed),
    )(x_p, w1, b1, w2, b2, w3, b3)

    return out_padded[:B, :OUT_DIM]


def init_params(key):
    """Deterministic synthetic init (uniform, PyTorch-Linear-style fan-in scaling)."""
    ks = jax.random.split(key, 6)

    def linear(kw, kb, fan_in, fan_out):
        bound = 1.0 / (fan_in ** 0.5)
        w = jax.random.uniform(kw, (fan_in, fan_out), jnp.float32, -bound, bound)
        b = jax.random.uniform(kb, (1, fan_out), jnp.float32, -bound, bound)
        return w, b

    w1, b1 = linear(ks[0], ks[1], OBS_DIM, HL[0])
    w2, b2 = linear(ks[2], ks[3], HL[0], HL[1])
    w3, b3 = linear(ks[4], ks[5], HL[1], OUT_DIM)
    return {"w1": w1, "b1": b1, "w2": w2, "b2": b2, "w3": w3, "b3": b3}


def vpg_ref(x, p):
    h = jnp.maximum(x @ p["w1"] + p["b1"], 0.0)
    h = jnp.maximum(h @ p["w2"] + p["b2"], 0.0)
    return h @ p["w3"] + p["b3"]


if __name__ == "__main__":
    key = jax.random.PRNGKey(0)
    k_param, k_x = jax.random.split(key)

    raw_params = init_params(k_param)
    params = prepare_params(raw_params)   # one-time pad + bf16 cast

    # Small test batch (single-tile fast path).
    batch = 8
    x = jax.random.normal(k_x, (batch, OBS_DIM), jnp.float32)
    out = jax.block_until_ready(vpg_forward(x, params))
    ref = vpg_ref(x, raw_params)
    assert out.shape == (batch, OUT_DIM)
    # bf16 MXU operands -> relaxed tolerance vs the f32 reference.
    assert jnp.allclose(out, ref, atol=2e-2, rtol=2e-2), "mismatch vs JAX reference"

    # Medium batch: exercises the v7x 2-step split path (default tile) and the
    # multi-step grid path with padding (explicit smaller tile).
    x2 = jax.random.normal(k_x, (300, OBS_DIM), jnp.float32)
    ref2 = vpg_ref(x2, raw_params)
    out2 = jax.block_until_ready(vpg_forward(x2, params))
    assert out2.shape == (300, OUT_DIM)
    assert jnp.allclose(out2, ref2, atol=2e-2, rtol=2e-2)
    out3 = jax.block_until_ready(vpg_forward(x2, params, batch_tile=128))
    assert jnp.allclose(out3, ref2, atol=2e-2, rtol=2e-2)

    print("KERNEL_OK")
</pallas_src>

<mosaic_0001>
module attributes {stable_mosaic.version = 11 : i64} {
  func.func @_mlp_kernel(%arg0: i32, %arg1: memref<8x8xbf16, #tpu.memory_space<vmem>>, %arg2: memref<8x128xbf16, #tpu.memory_space<vmem>>, %arg3: memref<1x128xf32, #tpu.memory_space<vmem>>, %arg4: memref<128x128xbf16, #tpu.memory_space<vmem>>, %arg5: memref<1x128xf32, #tpu.memory_space<vmem>>, %arg6: memref<128x128xbf16, #tpu.memory_space<vmem>>, %arg7: memref<1x8xf32, #tpu.memory_space<vmem>>, %arg8: memref<8x8xf32, #tpu.memory_space<vmem>>) attributes {dimension_semantics = [#tpu.dimension_semantics<parallel>], iteration_bounds = array<i64: 1>, scalar_prefetch = 0 : i64, scratch_operands = 0 : i64, tpu.core_type = #tpu.core_type<tc>, window_params = [{transform_indices = @transform_0, window_bounds = array<i64: 8, 8>}, {pipeline_mode = #tpu.pipeline_mode<synchronous>, transform_indices = @transform_1, window_bounds = array<i64: 8, 128>}, {pipeline_mode = #tpu.pipeline_mode<synchronous>, transform_indices = @transform_2, window_bounds = array<i64: 1, 128>}, {pipeline_mode = #tpu.pipeline_mode<synchronous>, transform_indices = @transform_3, window_bounds = array<i64: 128, 128>}, {pipeline_mode = #tpu.pipeline_mode<synchronous>, transform_indices = @transform_4, window_bounds = array<i64: 1, 128>}, {pipeline_mode = #tpu.pipeline_mode<synchronous>, transform_indices = @transform_5, window_bounds = array<i64: 128, 128>}, {pipeline_mode = #tpu.pipeline_mode<synchronous>, transform_indices = @transform_6, window_bounds = array<i64: 1, 8>}, {transform_indices = @transform_7, window_bounds = array<i64: 8, 8>}]} {
    %c0 = arith.constant 0 : index
    %c0_0 = arith.constant 0 : index
    %0 = vector.load %arg1[%c0, %c0_0] : memref<8x8xbf16, #tpu.memory_space<vmem>>, vector<8x8xbf16>
    %c0_1 = arith.constant 0 : index
    %c0_2 = arith.constant 0 : index
    %1 = vector.load %arg2[%c0_1, %c0_2] : memref<8x128xbf16, #tpu.memory_space<vmem>>, vector<8x128xbf16>
    %cst = arith.constant dense<0.000000e+00> : vector<8x128xf32>
    %2 = tpu.matmul %0, %1, %cst {dimension_numbers = #tpu.dot_dimension_numbers<[1], [0], [0], [1], [0, 0, 1, 1], [], []>} : vector<8x8xbf16>, vector<8x128xbf16>, vector<8x128xf32> -> vector<8x128xf32>
    %c0_3 = arith.constant 0 : index
    %c0_4 = arith.constant 0 : index
    %3 = vector.load %arg3[%c0_3, %c0_4] : memref<1x128xf32, #tpu.memory_space<vmem>>, vector<1x128xf32>
    %4 = vector.broadcast %3 : vector<1x128xf32> to vector<8x128xf32>
    %5 = arith.addf %2, %4 : vector<8x128xf32>
    %cst_5 = arith.constant 0.000000e+00 : f32
    %6 = vector.broadcast %cst_5 : f32 to vector<8x128xf32>
    %7 = arith.maximumf %5, %6 : vector<8x128xf32>
    %8 = arith.truncf %7 : vector<8x128xf32> to vector<8x128xbf16>
    %c0_6 = arith.constant 0 : index
    %c0_7 = arith.constant 0 : index
    %9 = vector.load %arg4[%c0_6, %c0_7] : memref<128x128xbf16, #tpu.memory_space<vmem>>, vector<128x128xbf16>
    %cst_8 = arith.constant dense<0.000000e+00> : vector<8x128xf32>
    %10 = tpu.matmul %8, %9, %cst_8 {dimension_numbers = #tpu.dot_dimension_numbers<[1], [0], [0], [1], [0, 0, 1, 1], [], []>} : vector<8x128xbf16>, vector<128x128xbf16>, vector<8x128xf32> -> vector<8x128xf32>
    %c0_9 = arith.constant 0 : index
    %c0_10 = arith.constant 0 : index
    %11 = vector.load %arg5[%c0_9, %c0_10] : memref<1x128xf32, #tpu.memory_space<vmem>>, vector<1x128xf32>
    %12 = vector.broadcast %11 : vector<1x128xf32> to vector<8x128xf32>
    %13 = arith.addf %10, %12 : vector<8x128xf32>
    %cst_11 = arith.constant 0.000000e+00 : f32
    %14 = vector.broadcast %cst_11 : f32 to vector<8x128xf32>
    %15 = arith.maximumf %13, %14 : vector<8x128xf32>
    %16 = arith.truncf %15 : vector<8x128xf32> to vector<8x128xbf16>
    %c0_12 = arith.constant 0 : index
    %c0_13 = arith.constant 0 : index
    %17 = vector.load %arg6[%c0_12, %c0_13] : memref<128x128xbf16, #tpu.memory_space<vmem>>, vector<128x128xbf16>
    %cst_14 = arith.constant dense<0.000000e+00> : vector<8x128xf32>
    %18 = tpu.matmul %16, %17, %cst_14 {dimension_numbers = #tpu.dot_dimension_numbers<[1], [0], [0], [1], [0, 0, 1, 1], [], []>} : vector<8x128xbf16>, vector<128x128xbf16>, vector<8x128xf32> -> vector<8x128xf32>
    %19 = vector.extract_strided_slice %18 {offsets = [0, 0], sizes = [8, 8], strides = [1, 1]} : vector<8x128xf32> to vector<8x8xf32>
    %c0_15 = arith.constant 0 : index
    %c0_16 = arith.constant 0 : index
    %20 = vector.load %arg7[%c0_15, %c0_16] : memref<1x8xf32, #tpu.memory_space<vmem>>, vector<1x8xf32>
    %21 = vector.broadcast %20 : vector<1x8xf32> to vector<8x8xf32>
    %22 = arith.addf %19, %21 : vector<8x8xf32>
    %c0_17 = arith.constant 0 : index
    %c0_18 = arith.constant 0 : index
    %23 = vector.load %arg8[%c0_17, %c0_18] : memref<8x8xf32, #tpu.memory_space<vmem>>, vector<8x8xf32>
    tpu.vector_store %arg8[%c0_17, %c0_18], %22 {strides = array<i32>} : memref<8x8xf32, #tpu.memory_space<vmem>>, vector<8x8xf32>,
    return
  }
  func.func @transform_0(%arg0: i32) -> (i32, i32) {
    %c0_i32 = arith.constant 0 : i32
    %c0_i32_0 = arith.constant 0 : i32
    return %arg0, %c0_i32 : i32, i32
  }
  func.func @transform_1(%arg0: i32) -> (i32, i32) {
    %c0_i32 = arith.constant 0 : i32
    %c0_i32_0 = arith.constant 0 : i32
    %c0_i32_1 = arith.constant 0 : i32
    return %c0_i32, %c0_i32_0 : i32, i32
  }
  func.func @transform_2(%arg0: i32) -> (i32, i32) {
    %c0_i32 = arith.constant 0 : i32
    %c0_i32_0 = arith.constant 0 : i32
    %c0_i32_1 = arith.constant 0 : i32
    return %c0_i32, %c0_i32_0 : i32, i32
  }
  func.func @transform_3(%arg0: i32) -> (i32, i32) {
    %c0_i32 = arith.constant 0 : i32
    %c0_i32_0 = arith.constant 0 : i32
    %c0_i32_1 = arith.constant 0 : i32
    return %c0_i32, %c0_i32_0 : i32, i32
  }
  func.func @transform_4(%arg0: i32) -> (i32, i32) {
    %c0_i32 = arith.constant 0 : i32
    %c0_i32_0 = arith.constant 0 : i32
    %c0_i32_1 = arith.constant 0 : i32
    return %c0_i32, %c0_i32_0 : i32, i32
  }
  func.func @transform_5(%arg0: i32) -> (i32, i32) {
    %c0_i32 = arith.constant 0 : i32
    %c0_i32_0 = arith.constant 0 : i32
    %c0_i32_1 = arith.constant 0 : i32
    return %c0_i32, %c0_i32_0 : i32, i32
  }
  func.func @transform_6(%arg0: i32) -> (i32, i32) {
    %c0_i32 = arith.constant 0 : i32
    %c0_i32_0 = arith.constant 0 : i32
    %c0_i32_1 = arith.constant 0 : i32
    return %c0_i32, %c0_i32_0 : i32, i32
  }
  func.func @transform_7(%arg0: i32) -> (i32, i32) {
    %c0_i32 = arith.constant 0 : i32
    %c0_i32_0 = arith.constant 0 : i32
    return %arg0, %c0_i32 : i32, i32
  }
}

</mosaic_0001>

<bundles_post_ra>
// kernel: tpu_custom_call.1
= control target key start
LH: loop header
LB: loop body
LE: loop exit
PB: predicated region body
PF: predicated region fallthrough
CT: control target
= control target key end

     0   :  { %12 = vsyncpa [#allocation3], 0  ;;  %s753_s0 = inlined_call_operand.hbm [shape: bf16[8,8], index: 0, kind: input, shape index: {}]   ;;  %s754_s1 = inlined_call_operand.hbm [shape: bf16[8,128], index: 1, kind: input, shape index: {}]   ;;  %s755_s2 = inlined_call_operand.vmem [shape: f32[1,128], index: 2, kind: input, shape index: {}]   ;;  %s756_s3 = inlined_call_operand.hbm [shape: bf16[128,128], index: 3, kind: input, shape index: {}]   ;;  %s757_s4 = inlined_call_operand.vmem [shape: f32[1,128], index: 4, kind: input, shape index: {}]   ;;  %s758_s5 = inlined_call_operand.hbm [shape: bf16[128,128], index: 5, kind: input, shape index: {}]   ;;  %s759_s6 = inlined_call_operand.vmem [shape: f32[1,8], index: 6, kind: input, shape index: {}]   ;;  %s760_s7 = inlined_call_operand.hbm [shape: f32[8,8], index: 7, kind: output, shape index: {}]  }
   0x1   :  { %13 = vsyncpa [#allocation6], 0 }
   0x2   :  { %14 = vsyncpa [#allocation9], 0 }
   0x3   :  { %15 = vsyncpa [#allocation4], 0  ;;  %s610_s24 = smov [#allocation5]   ;;  %s611_s26 = smov [#allocation2]  }
   0x4   :  { %s32_s25 = sshll.u32 %s610_s24, 4  ;;  %s22_s27 = sshll.u32 %s611_s26, 4  ;;  %s33_s25 = int_to_ptr.vmem [resolvable:$true] %s32_s25  ;;  %s23_s27 = int_to_ptr.vmem [resolvable:$true] %s22_s27 }
   0x5   :  { %s492_s30 = scalar_lea.hbm %s754_s1, 64 }
   0x6   :  { %p493_p0 = scmp.ne.s32.totalorder %s754_s1, %s492_s30  ;;  %p496_p1 = scmp.lt.u32.totalorder %s492_s30, %s754_s1 }
   0x8   :  { %p498_p2 = pnand %p496_p1, %p493_p0 }
   0xa   :  { %501 = shalt.err (!%p498_p2)
}
   0xb   :  { %s502_s12 = scalar_lea.vmem %s33_s25, 64  ;;  %p507_p4 = scmp.lt.s32.totalorder %s33_s25, %s33_s25 }
   0xc   :  { %p503_p3 = scmp.ne.s32.totalorder %s33_s25, %s502_s12  ;;  %p508_p5 = scmp.lt.s32.totalorder %s502_s12, %s502_s12 }
   0xe   :  { %p509_p6 = por %p508_p5, %p507_p4 }
  0x10   :  { %p510_p7 = pnand %p509_p6, %p503_p3 }
  0x12   :  { %513 = shalt.err (!%p510_p7)
}
  0x13   :  { %35 = dma.hbm_to_vmem [thread:$0]  %s754_s1, 64, %s33_s25, [#allocation6]  }
  0x14   :  { %s514_s17 = scalar_lea.hbm %s753_s0, 64 }
  0x15   :  { %p515_p8 = scmp.ne.s32.totalorder %s753_s0, %s514_s17  ;;  %p518_p9 = scmp.lt.u32.totalorder %s514_s17, %s753_s0 }
  0x17   :  { %p520_p10 = pnand %p518_p9, %p515_p8 }
  0x19   :  { %523 = shalt.err (!%p520_p10)
}
  0x1a   :  { %s524_s22 = scalar_lea.vmem %s23_s27, 64  ;;  %p529_p12 = scmp.lt.s32.totalorder %s23_s27, %s23_s27 }
  0x1b   :  { %p525_p11 = scmp.ne.s32.totalorder %s23_s27, %s524_s22  ;;  %p530_p13 = scmp.lt.s32.totalorder %s524_s22, %s524_s22 }
  0x1d   :  { %p531_p0 = por %p530_p13, %p529_p12 }
  0x1f   :  { %p532_p1 = pnand %p531_p0, %p525_p11 }
  0x21   :  { %535 = shalt.err (!%p532_p1)
}
  0x22   :  { %25 = dma.hbm_to_vmem [thread:$0]  %s753_s0, 64, %s23_s27, [#allocation3]  }
  0x23   :  { %s612_s24 = smov [#allocation7]   ;;  %s536_s29 = scalar_lea.hbm %s756_s3, 1024 }
  0x24   :  { %s43_s25 = sshll.u32 %s612_s24, 4  ;;  %p537_p2 = scmp.ne.s32.totalorder %s756_s3, %s536_s29  ;;  %s44_s25 = int_to_ptr.vmem [resolvable:$true] %s43_s25 }
  0x25   :  { %p540_p3 = scmp.lt.u32.totalorder %s536_s29, %s756_s3 }
  0x27   :  { %p542_p4 = pnand %p540_p3, %p537_p2 }
  0x29   :  { %545 = shalt.err (!%p542_p4)
}
  0x2a   :  { %s546_s11 = scalar_lea.vmem %s44_s25, 1024  ;;  %p551_p6 = scmp.lt.s32.totalorder %s44_s25, %s44_s25 }
  0x2b   :  { %p547_p5 = scmp.ne.s32.totalorder %s44_s25, %s546_s11  ;;  %p552_p7 = scmp.lt.s32.totalorder %s546_s11, %s546_s11 }
  0x2d   :  { %p553_p8 = por %p552_p7, %p551_p6 }
  0x2f   :  { %p554_p9 = pnand %p553_p8, %p547_p5 }
  0x31   :  { %557 = shalt.err (!%p554_p9)
}
  0x32   :  { %s613_s0 = smov 64   ;;  %s614_s27 = smov 4  }
  0x33   :  { %49 = dma.hbm_to_vmem [thread:$0]  %s756_s3, 1024, %s44_s25, [#allocation6], %s613_s0, %s613_s0, %s614_s27  }
  0x34   :  { %s615_s14 = smov [#allocation8]   ;;  %s558_s18 = scalar_lea.hbm %s758_s5, 1024 }
  0x35   :  { %s57_s15 = sshll.u32 %s615_s14, 4  ;;  %p559_p10 = scmp.ne.s32.totalorder %s758_s5, %s558_s18  ;;  %s58_s15 = int_to_ptr.vmem [resolvable:$true] %s57_s15 }
  0x36   :  { %p562_p11 = scmp.lt.u32.totalorder %s558_s18, %s758_s5 }
  0x38   :  { %p564_p12 = pnand %p562_p11, %p559_p10 }
  0x3a   :  { %567 = shalt.err (!%p564_p12)
}
  0x3b   :  { %s568_s1 = scalar_lea.vmem %s58_s15, 1024  ;;  %p573_p0 = scmp.lt.s32.totalorder %s58_s15, %s58_s15 }
  0x3c   :  { %p569_p13 = scmp.ne.s32.totalorder %s58_s15, %s568_s1  ;;  %p574_p1 = scmp.lt.s32.totalorder %s568_s1, %s568_s1 }
  0x3e   :  { %p575_p2 = por %p574_p1, %p573_p0 }
  0x40   :  { %p576_p3 = pnand %p575_p2, %p569_p13 }
  0x42   :  { %579 = shalt.err (!%p576_p3)
}
  0x43   :  { %63 = dma.hbm_to_vmem [thread:$0]  %s758_s5, 1024, %s58_s15, [#allocation9], %s613_s0, %s613_s0, %s614_s27  }
  0x44   :  { %602 = dma.done.wait [#allocation3], 64  }
  0x45   :  { %603 = vsyncadd [#allocation3], 4294967232 }
  0x46   :  { %604 = dma.done.wait [#allocation6], 1088  }
  0x47   :  { %605 = vsyncadd [#allocation6], 4294966208 }
  0x48   :  { %606 = dma.done.wait [#allocation9], 1024  }
  0x49   :  { %607 = vsyncadd [#allocation9], 4294966272  ;;  %v616_v0 = vmov 0.0   ;;  %vm617_vm0 = vmmov 0   ;;  %vm92_vm1 = vcmask 1043456   ;;  %vm88_vm2 = vcmask 64512  }
  0x4a   :  { %421 = vmatprep.subr.bf16.mxu0 %v616_v0  ;;  %423 = vmatprep.mubr.msk.bf16.mxu0 %vm617_vm0, %v616_v0  ;;  %v80_v1 = vld [vmem:[#allocation5] sm:$0xf]  ;;  %v476_v3 = vld [vmem:[#allocation7] sm:$0xff]   ;;  %v79_v4 = vld [vmem:[#allocation2] sm:$0xf]  ;;  %s618_s29 = smov [#allocation10]  }
  0x4b   :  { %427 = vmatprep.subr.bf16.mxu1 %v616_v0  ;;  %443 = vmatprep.mubr.msk.bf16.mxu1 %vm617_vm0, %v616_v0  ;;  %v94_v2 = vsel %vm92_vm1, %v80_v1, 0  ;;  %v477_v5 = vld [vmem:[#allocation7 + $0x8] sm:$0xff]   ;;  %v478_v6 = vld [vmem:[#allocation7 + $0x10] sm:$0xff]   ;;  %v479_v7 = vld [vmem:[#allocation7 + $0x18] sm:$0xff]   ;;  %s370_s30 = sshll.u32 %s618_s29, 4  ;;  %s371_s30 = int_to_ptr.vmem [resolvable:$true] %s370_s30 }
  0x4c   :  { %422 = vmatpush3.bf16.msra.mxu0 %v94_v2  ;;  %428 = vmatpush3.bf16.msra.mxu1 %v476_v3  ;;  %v480_v8 = vld [vmem:[#allocation7 + $0x20] sm:$0xff]   ;;  %v481_v9 = vld [vmem:[#allocation7 + $0x28] sm:$0xff]   ;;  %v482_v10 = vld [vmem:[#allocation7 + $0x30] sm:$0xff]   ;;  %p585_p5 = scmp.lt.s32.totalorder %s371_s30, %s371_s30 }
  0x4d   :  { %447 = vmatprep.subr.bf16.mxu0 %v616_v0  ;;  %429 = vmatprep.subr.bf16.mxu1 %v616_v0  ;;  %v483_v11 = vld [vmem:[#allocation7 + $0x38] sm:$0xff]   ;;  %v484_v12 = vld [vmem:[#allocation8] sm:$0xff]   ;;  %v485_v13 = vld [vmem:[#allocation8 + $0x8] sm:$0xff]  }
  0x4e   :  { %v486_v14 = vld [vmem:[#allocation8 + $0x10] sm:$0xff]   ;;  %v487_v15 = vld [vmem:[#allocation8 + $0x18] sm:$0xff]   ;;  %v488_v16 = vld [vmem:[#allocation8 + $0x20] sm:$0xff]  }
  0x4f   :  { %424 = vmatmul.mubr.msk.bf16.vlgmr.msra.gmra.mrb[0].mxu0 %vm88_vm2, %v79_v4  ;;  %v489_v17 = vld [vmem:[#allocation8 + $0x28] sm:$0xff]   ;;  %v381_v18 = vld [vmem:[%s755_s2] ss:$0 sm:$0xff]  ;;  %v490_v26 = vld [vmem:[#allocation8 + $0x30] sm:$0xff]  }
  0x50   :  { %463 = vmatprep.mubr.msk.bf16.mxu0 %vm617_vm0, %v616_v0  ;;  %430 = vmatpush3.bf16.msra.mxu1 %v477_v5  ;;  %v491_v27 = vld [vmem:[#allocation8 + $0x38] sm:$0xff]  }
  0x51   :  { %431 = vmatprep.subr.bf16.mxu1 %v616_v0  ;;  %448 = vmatpush3.bf16.msra.mxu0 %v484_v12  ;;  %v383_v28 = vld [vmem:[%s757_s4] ss:$0 sm:$0xff]  ;;  %s580_s4 = scalar_lea.vmem %s371_s30, 128 }
  0x52   :  { %449 = vmatprep.subr.bf16.mxu0 %v616_v0  ;;  %v400_v36 = vld [vmem:[%s759_s6] ss:$0 sm:$0xff]  ;;  %p581_p4 = scmp.ne.s32.totalorder %s371_s30, %s580_s4  ;;  %p586_p6 = scmp.lt.s32.totalorder %s580_s4, %s580_s4 }
  0x54   :  { %432 = vmatpush3.bf16.msra.mxu1 %v478_v6  ;;  %p587_p7 = por %p586_p6, %p585_p5 }
  0x55   :  { %433 = vmatprep.subr.bf16.mxu1 %v616_v0  ;;  %450 = vmatpush3.bf16.msra.mxu0 %v485_v13 }
  0x56   :  { %451 = vmatprep.subr.bf16.mxu0 %v616_v0  ;;  %p588_p8 = pnand %p587_p7, %p581_p4 }
  0x58   :  { %434 = vmatpush3.bf16.msra.mxu1 %v479_v7 }
  0x59   :  { %435 = vmatprep.subr.bf16.mxu1 %v616_v0  ;;  %452 = vmatpush3.bf16.msra.mxu0 %v486_v14 }
  0x5a   :  { %453 = vmatprep.subr.bf16.mxu0 %v616_v0 }
  0x5c   :  { %436 = vmatpush3.bf16.msra.mxu1 %v480_v8 }
  0x5d   :  { %437 = vmatprep.subr.bf16.mxu1 %v616_v0  ;;  %454 = vmatpush3.bf16.msra.mxu0 %v487_v15 }
  0x5e   :  { %455 = vmatprep.subr.bf16.mxu0 %v616_v0 }
  0x60   :  { %438 = vmatpush3.bf16.msra.mxu1 %v481_v9 }
  0x61   :  { %439 = vmatprep.subr.bf16.mxu1 %v616_v0  ;;  %456 = vmatpush3.bf16.msra.mxu0 %v488_v16 }
  0x62   :  { %457 = vmatprep.subr.bf16.mxu0 %v616_v0 }
  0x64   :  { %440 = vmatpush3.bf16.msra.mxu1 %v482_v10 }
  0x65   :  { %441 = vmatprep.subr.bf16.mxu1 %v616_v0  ;;  %458 = vmatpush3.bf16.msra.mxu0 %v489_v17 }
  0x66   :  { %459 = vmatprep.subr.bf16.mxu0 %v616_v0 }
  0x68   :  { %442 = vmatpush3.bf16.msra.mxu1 %v483_v11 }
  0x69   :  { %460 = vmatpush3.bf16.msra.mxu0 %v490_v26 }
  0x6a   :  { %461 = vmatprep.subr.bf16.mxu0 %v616_v0 }
  0x6d   :  { %462 = vmatpush3.bf16.msra.mxu0 %v491_v27 }
 0x122   :  { %v130_v19 = vpop.f32.mrb[0].mxu0 }
 0x123   :  { %v131_v20 = vadd.f32 %v381_v18, %v130_v19  ;;  %v425_v21 = vpop.f32.mrb[1].mxu0 }
 0x124   :  { %v133_v22 = vpop.f32.mrb[2].mxu0 }
 0x125   :  { %v136_v23 = vmax.f32 %v131_v20, 0.0  ;;  %v426_v24 = vpop.f32.mrb[3].mxu0 }
 0x127   :  { %v137_v25 = vpack.c.bf16 %v136_v23, %v136_v23 }
 0x129   :  { %444 = vmatmul.mubr.bf16.vlgmr.msra.gmra.mrb[0].mxu1 %v137_v25 }
 0x1fc   :  { %v243_v29 = vpop.f32.mrb[0].mxu1 }
 0x1fd   :  { %v244_v30 = vadd.f32 %v383_v28, %v243_v29  ;;  %v445_v31 = vpop.f32.mrb[1].mxu1 }
 0x1fe   :  { %v246_v32 = vpop.f32.mrb[2].mxu1 }
 0x1ff   :  { %v249_v33 = vmax.f32 %v244_v30, 0.0  ;;  %v446_v34 = vpop.f32.mrb[3].mxu1 }
 0x201   :  { %v250_v35 = vpack.c.bf16 %v249_v33, %v249_v33 }
 0x203   :  { %464 = vmatmul.mubr.bf16.vlgmr.msra.gmra.mrb[4].mxu0 %v250_v35 }
 0x2d6   :  { %v349_v37 = vpop.f32.mrb[4].mxu0 }
 0x2d7   :  { %v362_v38 = vadd.f32 %v400_v36, %v349_v37  ;;  %v465_v39 = vpop.f32.mrb[5].mxu0 }
 0x2d8   :  { %v352_v40 = vpop.f32.mrb[6].mxu0 }
 0x2d9   :  { %363 = vst.msk [vmem:[#allocation10] sm:$0xff] %vm88_vm2, %v362_v38  ;;  %v466_v41 = vpop.f32.mrb[7].mxu0 }
 0x2da   :  { %591 = shalt.err (!%p588_p8)
}
 0x2db   :  { %s592_s6 = scalar_lea.hbm %s760_s7, 128 }
 0x2dc   :  { %p593_p9 = scmp.ne.s32.totalorder %s760_s7, %s592_s6  ;;  %p596_p10 = scmp.lt.u32.totalorder %s592_s6, %s760_s7 }
 0x2de   :  { %p598_p11 = pnand %p596_p10, %p593_p9 }
 0x2e0   :  { %601 = shalt.err (!%p598_p11)
}
 0x2e1   :  { %373 = dma.vmem_to_hbm [thread:$0]  %s371_s30, 128, %s760_s7, [#allocation4]  }
 0x2e2   :  { %608 = dma.done.wait [#allocation4], 128  }
 0x2e3   :  { %609 = vsyncadd [#allocation4], 4294967168 }
 0x2e4   :  { %377 = vsyncpa [#allocation3], 1 }
 0x2e5   :  { %378 = vsyncpa [#allocation6], 1 }
 0x2e6   :  { %379 = vsyncpa [#allocation9], 1 }
 0x2e7   :  { %380 = vsyncpa [#allocation4], 1 }

</bundles_post_ra>
